<compile_context>
chip_gen: v7x
topology: tpu7x:2x2x1
jax: 0.10.0
libtpu: 0.0.40
codegen_flags: <defaults>
</compile_context>

<pallas_src>
import jax
import jax.numpy as jnp
from jax.experimental import pallas as pl
from jax.experimental.pallas import tpu as pltpu


INPUT_DIM = 64
H1, H2, H3 = 128, 256, 128
NUM_CLASSES = 9
OUT_PAD = 128          # lane-dense classifier output width (cols >= 9 are zero)
BN_EPS = 1e-5
MAX_TB = 1024          # batch tile (MXU M dim), multiple of 8; ~512 on v5e


def _vru_kernel(x_ref,
                w1_ref, b1_ref,
                w2_ref, b2_ref,
                w3_ref, b3_ref,
                wc_ref, bc_ref,
                out_ref):
    # Layer 1: Linear (BN scale folded into W) -> +bias(=BN shift) -> ReLU.
    # x arrives as f32 (tb, 64); cast to bf16 in-kernel (no wrapper pad/cast).
    h = jnp.dot(x_ref[...].astype(jnp.bfloat16), w1_ref[...],
                preferred_element_type=jnp.float32)
    h = jnp.maximum(h + b1_ref[...], 0.0)
    # Layer 2
    h = jnp.dot(h.astype(jnp.bfloat16), w2_ref[...],
                preferred_element_type=jnp.float32)
    h = jnp.maximum(h + b2_ref[...], 0.0)
    # Layer 3
    h = jnp.dot(h.astype(jnp.bfloat16), w3_ref[...],
                preferred_element_type=jnp.float32)
    h = jnp.maximum(h + b3_ref[...], 0.0)
    # Classifier: lane-dense 128-wide tile; store bf16 to halve HBM writeback.
    logits = jnp.dot(h.astype(jnp.bfloat16), wc_ref[...],
                     preferred_element_type=jnp.float32) + bc_ref[...]
    out_ref[...] = logits.astype(out_ref.dtype)


def _const_spec(shape):
    # Whole-array block, same block on every grid step (stays VMEM-resident).
    ndim = len(shape)
    return pl.BlockSpec(shape, lambda i, _n=ndim: (0,) * _n)


def vru_forward(x, params):
    """x: (B, INPUT_DIM) float32 -> {'cls_preds': (B, 9), 'box_preds': (B, 7)}."""
    B = x.shape[0]
    (w1, b1, w2, b2, w3, b3, wc, bc) = params

    # Batch tile: large (amortizes per-step overhead) but capped at ceil(B/2)
    # so the parallel batch axis has >= 2 steps for v7x megacore sharding.
    half = -(-B // 2)                                  # ceil(B / 2)
    tb = max(8, min(MAX_TB, ((half + 7) // 8) * 8))
    grid = (pl.cdiv(B, tb),)

    in_specs = [pl.BlockSpec((tb, INPUT_DIM), lambda i: (i, 0))]
    for p in (w1, b1, w2, b2, w3, b3, wc, bc):
        in_specs.append(_const_spec(p.shape))

    weight_bytes = sum(int(p.size) * p.dtype.itemsize
                       for p in (w1, b1, w2, b2, w3, b3, wc, bc))
    flops_per_row = 2 * (INPUT_DIM * H1 + H1 * H2 + H2 * H3 + H3 * OUT_PAD)
    cost = pl.CostEstimate(
        flops=flops_per_row * B,
        transcendentals=0,
        bytes_accessed=B * INPUT_DIM * 4 + B * OUT_PAD * 2 + weight_bytes)

    out_padded = pl.pallas_call(
        _vru_kernel,
        out_shape=jax.ShapeDtypeStruct((B, OUT_PAD), jnp.bfloat16),
        grid=grid,
        in_specs=in_specs,
        out_specs=pl.BlockSpec((tb, OUT_PAD), lambda i: (i, 0)),
        compiler_params=pltpu.CompilerParams(
            dimension_semantics=("parallel",)),
        cost_estimate=cost,
    )(x, w1, b1, w2, b2, w3, b3, wc, bc)

    # Slice+upcast of the lane-dense bf16 tile (cheap: 256 B/row read).
    logits = out_padded[:, :NUM_CLASSES].astype(jnp.float32)
    # box_preds is a constant-zero tensor in the reference model (plain JAX glue).
    box_preds = jnp.zeros((B, 7), dtype=x.dtype)
    return {"cls_preds": logits, "box_preds": box_preds}


def init_params(key):
    """Deterministic init mirroring the module's shapes, with BN (eval) folded.

    For each Linear(d_in, d_out) + BatchNorm1d(d_out):
        s = gamma / sqrt(running_var + eps)
        t = (bias - running_mean) * s + beta
        y = (x @ W) * s + t == x @ (W * s) + t      # fold s into W offline
    Weights are stored bf16 (MXU operands); biases stay f32, shaped (1, d_out).
    Classifier weight/bias are zero-padded to 128 columns (lane-dense output).
    """
    dims = [(INPUT_DIM, H1), (H1, H2), (H2, H3)]
    keys = jax.random.split(key, 14)
    ki = 0
    params = []
    for (d_in, d_out) in dims:
        w = jax.random.normal(keys[ki], (d_in, d_out), jnp.float32) * 0.05
        ki += 1
        b = jax.random.normal(keys[ki], (d_out,), jnp.float32) * 0.01
        ki += 1
        gamma = 1.0 + 0.1 * jax.random.normal(keys[ki], (d_out,), jnp.float32)
        ki += 1
        beta = 0.01 * jax.random.normal(keys[ki], (d_out,), jnp.float32)
        ki += 1
        running_mean = jnp.zeros((d_out,), jnp.float32)
        running_var = jnp.ones((d_out,), jnp.float32)
        s = gamma / jnp.sqrt(running_var + BN_EPS)
        t = (b - running_mean) * s + beta
        w_f = w * s[None, :]                       # fold BN scale into weight
        params.extend([w_f.astype(jnp.bfloat16),
                       t.reshape(1, d_out).astype(jnp.float32)])

    wc = jax.random.normal(keys[ki], (H3, NUM_CLASSES), jnp.float32) * 0.05
    ki += 1
    bc = 0.01 * jax.random.normal(keys[ki], (NUM_CLASSES,), jnp.float32)
    wc_p = jnp.pad(wc, ((0, 0), (0, OUT_PAD - NUM_CLASSES)))
    bc_p = jnp.pad(bc, ((0, OUT_PAD - NUM_CLASSES),)).reshape(1, OUT_PAD)
    params.extend([wc_p.astype(jnp.bfloat16), bc_p.astype(jnp.float32)])
    return tuple(params)


def _ref_forward(x, params):
    """Pure-JAX reference with the same folded bf16 params / f32 accumulation."""
    (w1, b1, w2, b2, w3, b3, wc, bc) = params
    h = jnp.maximum(jnp.dot(x.astype(jnp.bfloat16), w1,
                            preferred_element_type=jnp.float32) + b1, 0.0)
    h = jnp.maximum(jnp.dot(h.astype(jnp.bfloat16), w2,
                            preferred_element_type=jnp.float32) + b2, 0.0)
    h = jnp.maximum(jnp.dot(h.astype(jnp.bfloat16), w3,
                            preferred_element_type=jnp.float32) + b3, 0.0)
    out = jnp.dot(h.astype(jnp.bfloat16), wc,
                  preferred_element_type=jnp.float32) + bc
    return out.astype(jnp.bfloat16).astype(jnp.float32)[:, :NUM_CLASSES]


if __name__ == "__main__":
    key = jax.random.PRNGKey(0)
    pkey, xkey = jax.random.split(key)
    params = init_params(pkey)

    # Small shapes: exercises both the single-step grid (B=8) and the
    # multi-step / partial-last-block path (B=20 with tb=16).
    for B in (8, 20):
        x = jax.random.normal(jax.random.fold_in(xkey, B), (B, INPUT_DIM),
                              jnp.float32)
        out = vru_forward(x, params)
        jax.block_until_ready(out)

        assert out["cls_preds"].shape == (B, NUM_CLASSES)
        assert out["box_preds"].shape == (B, 7)

        ref = _ref_forward(x, params)
        assert jnp.allclose(out["cls_preds"], ref, atol=2e-2, rtol=2e-2)
        assert bool(jnp.all(out["box_preds"] == 0))

    print("KERNEL_OK")
</pallas_src>

<mosaic_0001>
module attributes {stable_mosaic.version = 11 : i64} {
  func.func @_vru_kernel(%arg0: i32, %arg1: memref<8x64xf32, #tpu.memory_space<vmem>>, %arg2: memref<64x128xbf16, #tpu.memory_space<vmem>>, %arg3: memref<1x128xf32, #tpu.memory_space<vmem>>, %arg4: memref<128x256xbf16, #tpu.memory_space<vmem>>, %arg5: memref<1x256xf32, #tpu.memory_space<vmem>>, %arg6: memref<256x128xbf16, #tpu.memory_space<vmem>>, %arg7: memref<1x128xf32, #tpu.memory_space<vmem>>, %arg8: memref<128x128xbf16, #tpu.memory_space<vmem>>, %arg9: memref<1x128xf32, #tpu.memory_space<vmem>>, %arg10: memref<8x128xbf16, #tpu.memory_space<vmem>>) attributes {dimension_semantics = [#tpu.dimension_semantics<parallel>], iteration_bounds = array<i64: 1>, scalar_prefetch = 0 : i64, scratch_operands = 0 : i64, tpu.core_type = #tpu.core_type<tc>, window_params = [{transform_indices = @transform_0, window_bounds = array<i64: 8, 64>}, {pipeline_mode = #tpu.pipeline_mode<synchronous>, transform_indices = @transform_1, window_bounds = array<i64: 64, 128>}, {pipeline_mode = #tpu.pipeline_mode<synchronous>, transform_indices = @transform_2, window_bounds = array<i64: 1, 128>}, {pipeline_mode = #tpu.pipeline_mode<synchronous>, transform_indices = @transform_3, window_bounds = array<i64: 128, 256>}, {pipeline_mode = #tpu.pipeline_mode<synchronous>, transform_indices = @transform_4, window_bounds = array<i64: 1, 256>}, {pipeline_mode = #tpu.pipeline_mode<synchronous>, transform_indices = @transform_5, window_bounds = array<i64: 256, 128>}, {pipeline_mode = #tpu.pipeline_mode<synchronous>, transform_indices = @transform_6, window_bounds = array<i64: 1, 128>}, {pipeline_mode = #tpu.pipeline_mode<synchronous>, transform_indices = @transform_7, window_bounds = array<i64: 128, 128>}, {pipeline_mode = #tpu.pipeline_mode<synchronous>, transform_indices = @transform_8, window_bounds = array<i64: 1, 128>}, {transform_indices = @transform_9, window_bounds = array<i64: 8, 128>}]} {
    %c0 = arith.constant 0 : index
    %c0_0 = arith.constant 0 : index
    %0 = vector.load %arg1[%c0, %c0_0] : memref<8x64xf32, #tpu.memory_space<vmem>>, vector<8x64xf32>
    %1 = arith.truncf %0 : vector<8x64xf32> to vector<8x64xbf16>
    %c0_1 = arith.constant 0 : index
    %c0_2 = arith.constant 0 : index
    %2 = vector.load %arg2[%c0_1, %c0_2] : memref<64x128xbf16, #tpu.memory_space<vmem>>, vector<64x128xbf16>
    %cst = arith.constant dense<0.000000e+00> : vector<8x128xf32>
    %3 = tpu.matmul %1, %2, %cst {dimension_numbers = #tpu.dot_dimension_numbers<[1], [0], [0], [1], [0, 0, 1, 1], [], []>} : vector<8x64xbf16>, vector<64x128xbf16>, vector<8x128xf32> -> vector<8x128xf32>
    %c0_3 = arith.constant 0 : index
    %c0_4 = arith.constant 0 : index
    %4 = vector.load %arg3[%c0_3, %c0_4] : memref<1x128xf32, #tpu.memory_space<vmem>>, vector<1x128xf32>
    %5 = vector.broadcast %4 : vector<1x128xf32> to vector<8x128xf32>
    %6 = arith.addf %3, %5 : vector<8x128xf32>
    %cst_5 = arith.constant 0.000000e+00 : f32
    %7 = vector.broadcast %cst_5 : f32 to vector<8x128xf32>
    %8 = arith.maximumf %6, %7 : vector<8x128xf32>
    %9 = arith.truncf %8 : vector<8x128xf32> to vector<8x128xbf16>
    %c0_6 = arith.constant 0 : index
    %c0_7 = arith.constant 0 : index
    %10 = vector.load %arg4[%c0_6, %c0_7] : memref<128x256xbf16, #tpu.memory_space<vmem>>, vector<128x256xbf16>
    %cst_8 = arith.constant dense<0.000000e+00> : vector<8x256xf32>
    %11 = tpu.matmul %9, %10, %cst_8 {dimension_numbers = #tpu.dot_dimension_numbers<[1], [0], [0], [1], [0, 0, 1, 1], [], []>} : vector<8x128xbf16>, vector<128x256xbf16>, vector<8x256xf32> -> vector<8x256xf32>
    %c0_9 = arith.constant 0 : index
    %c0_10 = arith.constant 0 : index
    %12 = vector.load %arg5[%c0_9, %c0_10] : memref<1x256xf32, #tpu.memory_space<vmem>>, vector<1x256xf32>
    %13 = vector.broadcast %12 : vector<1x256xf32> to vector<8x256xf32>
    %14 = arith.addf %11, %13 : vector<8x256xf32>
    %cst_11 = arith.constant 0.000000e+00 : f32
    %15 = vector.broadcast %cst_11 : f32 to vector<8x256xf32>
    %16 = arith.maximumf %14, %15 : vector<8x256xf32>
    %17 = arith.truncf %16 : vector<8x256xf32> to vector<8x256xbf16>
    %c0_12 = arith.constant 0 : index
    %c0_13 = arith.constant 0 : index
    %18 = vector.load %arg6[%c0_12, %c0_13] : memref<256x128xbf16, #tpu.memory_space<vmem>>, vector<256x128xbf16>
    %cst_14 = arith.constant dense<0.000000e+00> : vector<8x128xf32>
    %19 = tpu.matmul %17, %18, %cst_14 {dimension_numbers = #tpu.dot_dimension_numbers<[1], [0], [0], [1], [0, 0, 1, 1], [], []>} : vector<8x256xbf16>, vector<256x128xbf16>, vector<8x128xf32> -> vector<8x128xf32>
    %c0_15 = arith.constant 0 : index
    %c0_16 = arith.constant 0 : index
    %20 = vector.load %arg7[%c0_15, %c0_16] : memref<1x128xf32, #tpu.memory_space<vmem>>, vector<1x128xf32>
    %21 = vector.broadcast %20 : vector<1x128xf32> to vector<8x128xf32>
    %22 = arith.addf %19, %21 : vector<8x128xf32>
    %cst_17 = arith.constant 0.000000e+00 : f32
    %23 = vector.broadcast %cst_17 : f32 to vector<8x128xf32>
    %24 = arith.maximumf %22, %23 : vector<8x128xf32>
    %25 = arith.truncf %24 : vector<8x128xf32> to vector<8x128xbf16>
    %c0_18 = arith.constant 0 : index
    %c0_19 = arith.constant 0 : index
    %26 = vector.load %arg8[%c0_18, %c0_19] : memref<128x128xbf16, #tpu.memory_space<vmem>>, vector<128x128xbf16>
    %cst_20 = arith.constant dense<0.000000e+00> : vector<8x128xf32>
    %27 = tpu.matmul %25, %26, %cst_20 {dimension_numbers = #tpu.dot_dimension_numbers<[1], [0], [0], [1], [0, 0, 1, 1], [], []>} : vector<8x128xbf16>, vector<128x128xbf16>, vector<8x128xf32> -> vector<8x128xf32>
    %c0_21 = arith.constant 0 : index
    %c0_22 = arith.constant 0 : index
    %28 = vector.load %arg9[%c0_21, %c0_22] : memref<1x128xf32, #tpu.memory_space<vmem>>, vector<1x128xf32>
    %29 = vector.broadcast %28 : vector<1x128xf32> to vector<8x128xf32>
    %30 = arith.addf %27, %29 : vector<8x128xf32>
    %31 = arith.truncf %30 : vector<8x128xf32> to vector<8x128xbf16>
    %c0_23 = arith.constant 0 : index
    %c0_24 = arith.constant 0 : index
    %32 = vector.load %arg10[%c0_23, %c0_24] : memref<8x128xbf16, #tpu.memory_space<vmem>>, vector<8x128xbf16>
    tpu.vector_store %arg10[%c0_23, %c0_24], %31 {strides = array<i32>} : memref<8x128xbf16, #tpu.memory_space<vmem>>, vector<8x128xbf16>,
    return
  }
  func.func @transform_0(%arg0: i32) -> (i32, i32) {
    %c0_i32 = arith.constant 0 : i32
    %c0_i32_0 = arith.constant 0 : i32
    return %arg0, %c0_i32 : i32, i32
  }
  func.func @transform_1(%arg0: i32) -> (i32, i32) {
    %c0_i32 = arith.constant 0 : i32
    %c0_i32_0 = arith.constant 0 : i32
    %c0_i32_1 = arith.constant 0 : i32
    return %c0_i32, %c0_i32_0 : i32, i32
  }
  func.func @transform_2(%arg0: i32) -> (i32, i32) {
    %c0_i32 = arith.constant 0 : i32
    %c0_i32_0 = arith.constant 0 : i32
    %c0_i32_1 = arith.constant 0 : i32
    return %c0_i32, %c0_i32_0 : i32, i32
  }
  func.func @transform_3(%arg0: i32) -> (i32, i32) {
    %c0_i32 = arith.constant 0 : i32
    %c0_i32_0 = arith.constant 0 : i32
    %c0_i32_1 = arith.constant 0 : i32
    return %c0_i32, %c0_i32_0 : i32, i32
  }
  func.func @transform_4(%arg0: i32) -> (i32, i32) {
    %c0_i32 = arith.constant 0 : i32
    %c0_i32_0 = arith.constant 0 : i32
    %c0_i32_1 = arith.constant 0 : i32
    return %c0_i32, %c0_i32_0 : i32, i32
  }
  func.func @transform_5(%arg0: i32) -> (i32, i32) {
    %c0_i32 = arith.constant 0 : i32
    %c0_i32_0 = arith.constant 0 : i32
    %c0_i32_1 = arith.constant 0 : i32
    return %c0_i32, %c0_i32_0 : i32, i32
  }
  func.func @transform_6(%arg0: i32) -> (i32, i32) {
    %c0_i32 = arith.constant 0 : i32
    %c0_i32_0 = arith.constant 0 : i32
    %c0_i32_1 = arith.constant 0 : i32
    return %c0_i32, %c0_i32_0 : i32, i32
  }
  func.func @transform_7(%arg0: i32) -> (i32, i32) {
    %c0_i32 = arith.constant 0 : i32
    %c0_i32_0 = arith.constant 0 : i32
    %c0_i32_1 = arith.constant 0 : i32
    return %c0_i32, %c0_i32_0 : i32, i32
  }
  func.func @transform_8(%arg0: i32) -> (i32, i32) {
    %c0_i32 = arith.constant 0 : i32
    %c0_i32_0 = arith.constant 0 : i32
    %c0_i32_1 = arith.constant 0 : i32
    return %c0_i32, %c0_i32_0 : i32, i32
  }
  func.func @transform_9(%arg0: i32) -> (i32, i32) {
    %c0_i32 = arith.constant 0 : i32
    %c0_i32_0 = arith.constant 0 : i32
    return %arg0, %c0_i32 : i32, i32
  }
}

</mosaic_0001>

<bundles_post_ra>
// kernel: tpu_custom_call.1
= control target key start
LH: loop header
LB: loop body
LE: loop exit
PB: predicated region body
PF: predicated region fallthrough
CT: control target
= control target key end

     0   :  { %14 = vsyncpa [#allocation3], 0  ;;  %s1140_s0 = inlined_call_operand.hbm [shape: f32[8,64], index: 0, kind: input, shape index: {}]   ;;  %s1141_s1 = inlined_call_operand.hbm [shape: bf16[64,128], index: 1, kind: input, shape index: {}]   ;;  %s1142_s2 = inlined_call_operand.vmem [shape: f32[1,128], index: 2, kind: input, shape index: {}]   ;;  %s1143_s3 = inlined_call_operand.hbm [shape: bf16[128,256], index: 3, kind: input, shape index: {}]   ;;  %s1144_s4 = inlined_call_operand.vmem [shape: f32[1,256], index: 4, kind: input, shape index: {}]   ;;  %s1145_s5 = inlined_call_operand.hbm [shape: bf16[256,128], index: 5, kind: input, shape index: {}]   ;;  %s1146_s6 = inlined_call_operand.vmem [shape: f32[1,128], index: 6, kind: input, shape index: {}]   ;;  %s1147_s7 = inlined_call_operand.hbm [shape: bf16[128,128], index: 7, kind: input, shape index: {}]   ;;  %s1148_s8 = inlined_call_operand.vmem [shape: f32[1,128], index: 8, kind: input, shape index: {}]   ;;  %s1149_s9 = inlined_call_operand.hbm [shape: bf16[8,128], index: 9, kind: output, shape index: {}]  }
   0x1   :  { %15 = vsyncpa [#allocation6], 0 }
   0x2   :  { %16 = vsyncpa [#allocation9], 0 }
   0x3   :  { %17 = vsyncpa [#allocation4], 0  ;;  %s968_s30 = smov [#allocation5]   ;;  %s828_s13 = scalar_lea.hbm %s1141_s1, 512 }
   0x4   :  { %s33_s10 = sshll.u32 %s968_s30, 4  ;;  %p829_p0 = scmp.ne.s32.totalorder %s1141_s1, %s828_s13  ;;  %s34_s10 = int_to_ptr.vmem [resolvable:$true] %s33_s10 }
   0x5   :  { %p832_p1 = scmp.lt.u32.totalorder %s828_s13, %s1141_s1 }
   0x7   :  { %p834_p2 = pnand %p832_p1, %p829_p0 }
   0x9   :  { %837 = shalt.err (!%p834_p2)
}
   0xa   :  { %s838_s18 = scalar_lea.vmem %s34_s10, 512  ;;  %p843_p4 = scmp.lt.s32.totalorder %s34_s10, %s34_s10 }
   0xb   :  { %p839_p3 = scmp.ne.s32.totalorder %s34_s10, %s838_s18  ;;  %p844_p5 = scmp.lt.s32.totalorder %s838_s18, %s838_s18 }
   0xd   :  { %p845_p6 = por %p844_p5, %p843_p4 }
   0xf   :  { %p846_p7 = pnand %p845_p6, %p839_p3 }
  0x11   :  { %849 = shalt.err (!%p846_p7)
}
  0x12   :  { %s969_s19 = smov 64   ;;  %s970_s20 = smov 4  }
  0x13   :  { %39 = dma.hbm_to_vmem [thread:$0]  %s1141_s1, 512, %s34_s10, [#allocation6], %s969_s19, %s969_s19, %s970_s20  }
  0x14   :  { %s971_s23 = smov [#allocation8]   ;;  %s972_s25 = smov [#allocation2]  }
  0x15   :  { %s61_s24 = sshll.u32 %s971_s23, 4  ;;  %s24_s26 = sshll.u32 %s972_s25, 4  ;;  %s62_s24 = int_to_ptr.vmem [resolvable:$true] %s61_s24  ;;  %s25_s26 = int_to_ptr.vmem [resolvable:$true] %s24_s26 }
  0x16   :  { %s850_s29 = scalar_lea.hbm %s1145_s5, 2048 }
  0x17   :  { %p851_p8 = scmp.ne.s32.totalorder %s1145_s5, %s850_s29  ;;  %p854_p9 = scmp.lt.u32.totalorder %s850_s29, %s1145_s5 }
  0x19   :  { %p856_p10 = pnand %p854_p9, %p851_p8 }
  0x1b   :  { %859 = shalt.err (!%p856_p10)
}
  0x1c   :  { %s860_s1 = scalar_lea.vmem %s62_s24, 2048  ;;  %p865_p12 = scmp.lt.s32.totalorder %s62_s24, %s62_s24 }
  0x1d   :  { %p861_p11 = scmp.ne.s32.totalorder %s62_s24, %s860_s1  ;;  %p866_p13 = scmp.lt.s32.totalorder %s860_s1, %s860_s1 }
  0x1f   :  { %p867_p0 = por %p866_p13, %p865_p12 }
  0x21   :  { %p868_p1 = pnand %p867_p0, %p861_p11 }
  0x23   :  { %871 = shalt.err (!%p868_p1)
}
  0x24   :  { %67 = dma.hbm_to_vmem [thread:$0]  %s1145_s5, 2048, %s62_s24, [#allocation9], %s969_s19, %s969_s19, %s970_s20  }
  0x25   :  { %s872_s17 = scalar_lea.hbm %s1140_s0, 128 }
  0x26   :  { %p873_p2 = scmp.ne.s32.totalorder %s1140_s0, %s872_s17  ;;  %p876_p3 = scmp.lt.u32.totalorder %s872_s17, %s1140_s0 }
  0x28   :  { %p878_p4 = pnand %p876_p3, %p873_p2 }
  0x2a   :  { %881 = shalt.err (!%p878_p4)
}
  0x2b   :  { %s882_s25 = scalar_lea.vmem %s25_s26, 128  ;;  %p887_p6 = scmp.lt.s32.totalorder %s25_s26, %s25_s26 }
  0x2c   :  { %p883_p5 = scmp.ne.s32.totalorder %s25_s26, %s882_s25  ;;  %p888_p7 = scmp.lt.s32.totalorder %s882_s25, %s882_s25 }
  0x2e   :  { %p889_p8 = por %p888_p7, %p887_p6 }
  0x30   :  { %p890_p9 = pnand %p889_p8, %p883_p5 }
  0x32   :  { %893 = shalt.err (!%p890_p9)
}
  0x33   :  { %27 = dma.hbm_to_vmem [thread:$0]  %s1140_s0, 128, %s25_s26, [#allocation3]  }
  0x34   :  { %s973_s27 = smov [#allocation7]   ;;  %s894_s11 = scalar_lea.hbm %s1143_s3, 2048 }
  0x35   :  { %s47_s28 = sshll.u32 %s973_s27, 4  ;;  %p895_p10 = scmp.ne.s32.totalorder %s1143_s3, %s894_s11  ;;  %s48_s28 = int_to_ptr.vmem [resolvable:$true] %s47_s28 }
  0x36   :  { %p898_p11 = scmp.lt.u32.totalorder %s894_s11, %s1143_s3 }
  0x38   :  { %p900_p12 = pnand %p898_p11, %p895_p10 }
  0x3a   :  { %903 = shalt.err (!%p900_p12)
}
  0x3b   :  { %s904_s14 = scalar_lea.vmem %s48_s28, 2048  ;;  %p909_p0 = scmp.lt.s32.totalorder %s48_s28, %s48_s28 }
  0x3c   :  { %p905_p13 = scmp.ne.s32.totalorder %s48_s28, %s904_s14  ;;  %p910_p1 = scmp.lt.s32.totalorder %s904_s14, %s904_s14 }
  0x3e   :  { %p911_p2 = por %p910_p1, %p909_p0 }
  0x40   :  { %p912_p3 = pnand %p911_p2, %p905_p13 }
  0x42   :  { %915 = shalt.err (!%p912_p3)
}
  0x43   :  { %s974_s0 = smov 128   ;;  %s975_s26 = smov 8  }
  0x44   :  { %53 = dma.hbm_to_vmem [thread:$0]  %s1143_s3, 2048, %s48_s28, [#allocation6], %s974_s0, %s974_s0, %s975_s26  }
  0x45   :  { %s976_s17 = smov [#allocation10]   ;;  %s916_s23 = scalar_lea.hbm %s1147_s7, 1024 }
  0x46   :  { %s75_s18 = sshll.u32 %s976_s17, 4  ;;  %p917_p4 = scmp.ne.s32.totalorder %s1147_s7, %s916_s23  ;;  %s76_s18 = int_to_ptr.vmem [resolvable:$true] %s75_s18 }
  0x47   :  { %p920_p5 = scmp.lt.u32.totalorder %s916_s23, %s1147_s7 }
  0x49   :  { %p922_p6 = pnand %p920_p5, %p917_p4 }
  0x4b   :  { %925 = shalt.err (!%p922_p6)
}
  0x4c   :  { %s926_s29 = scalar_lea.vmem %s76_s18, 1024  ;;  %p931_p8 = scmp.lt.s32.totalorder %s76_s18, %s76_s18 }
  0x4d   :  { %p927_p7 = scmp.ne.s32.totalorder %s76_s18, %s926_s29  ;;  %p932_p9 = scmp.lt.s32.totalorder %s926_s29, %s926_s29 }
  0x4f   :  { %p933_p10 = por %p932_p9, %p931_p8 }
  0x51   :  { %p934_p11 = pnand %p933_p10, %p927_p7 }
  0x53   :  { %937 = shalt.err (!%p934_p11)
}
  0x54   :  { %81 = dma.hbm_to_vmem [thread:$0]  %s1147_s7, 1024, %s76_s18, [#allocation9], %s969_s19, %s969_s19, %s970_s20  }
  0x55   :  { %960 = dma.done.wait [#allocation3], 128  }
  0x56   :  { %961 = vsyncadd [#allocation3], 4294967168 }
  0x57   :  { %962 = dma.done.wait [#allocation6], 2560  }
  0x58   :  { %963 = vsyncadd [#allocation6], 4294964736 }
  0x59   :  { %964 = dma.done.wait [#allocation9], 3072  }
  0x5a   :  { %965 = vsyncadd [#allocation9], 4294964224  ;;  %v977_v0 = vmov 0.0   ;;  %vm978_vm0 = vmmov 0   ;;  %v776_v1 = vld [vmem:[#allocation5] sm:$0xff]   ;;  %v777_v2 = vld [vmem:[#allocation5 + $0x8] sm:$0xff]   ;;  %v205_v54 = vlaneseq }
  0x5b   :  { %731 = vmatprep.subr.bf16.mxu0 %v977_v0  ;;  %739 = vmatprep.mubr.msk.bf16.mxu0 %vm978_vm0, %v977_v0  ;;  %v780_v3 = vld [vmem:[#allocation7 + $0x4] ss:$8 sps:$4 sm:$0xff]   ;;  %v782_v4 = vld [vmem:[#allocation7] ss:$8 sps:$4 sm:$0xff]   ;;  %v778_v5 = vld [vmem:[#allocation5 + $0x10] sm:$0xff]   ;;  %vm141_vm1 = vcmask 523264  }
  0x5c   :  { %732 = vmatpush3.bf16.msra.mxu0 %v776_v1  ;;  %v783_v6 = vld [vmem:[#allocation7 + $0x14] ss:$8 sps:$4 sm:$0xff]   ;;  %295 = vmatprep.subr.bf16.mxu1 %v780_v3  ;;  %v785_v7 = vld [vmem:[#allocation7 + $0x10] ss:$8 sps:$4 sm:$0xff]   ;;  %v786_v8 = vld [vmem:[#allocation7 + $0x24] ss:$8 sps:$4 sm:$0xff]  }
  0x5d   :  { %733 = vmatprep.subr.bf16.mxu0 %v977_v0  ;;  %296 = vmatpush1.bf16.msra.mxu1 %v782_v4  ;;  %v779_v9 = vld [vmem:[#allocation5 + $0x18] sm:$0xff]   ;;  %v788_v11 = vld [vmem:[#allocation7 + $0x20] ss:$8 sps:$4 sm:$0xff]   ;;  %v792_v15 = vld [vmem:[#allocation7 + $0x44] ss:$8 sps:$4 sm:$0xff]   ;;  %v979_v23 = vmov 0  }
  0x5e   :  { %297 = vmatprep.subr.bf16.mxu1 %v783_v6  ;;  %v100_v10 = vld [vmem:[#allocation2] sm:$0xff]  ;;  %v794_v16 = vld [vmem:[#allocation7 + $0x40] ss:$8 sps:$4 sm:$0xff]   ;;  %v798_v19 = vld [vmem:[#allocation7 + $0x64] ss:$8 sps:$4 sm:$0xff]   ;;  %327 = vmatprep.mubr.bf16.mxu1 %v979_v23  ;;  %v206_v55 = vshrl.u32 %v205_v54, 7 }
  0x5f   :  { %v101_v12 = vpack.c.bf16 %v100_v10, %v100_v10  ;;  %v789_v13 = vld [vmem:[#allocation7 + $0x34] ss:$8 sps:$4 sm:$0xff]   ;;  %v791_v14 = vld [vmem:[#allocation7 + $0x30] ss:$8 sps:$4 sm:$0xff]   ;;  %v800_v20 = vld [vmem:[#allocation7 + $0x60] ss:$8 sps:$4 sm:$0xff]  }
  0x60   :  { %734 = vmatpush3.bf16.msra.mxu0 %v777_v2  ;;  %v795_v17 = vld [vmem:[#allocation7 + $0x54] ss:$8 sps:$4 sm:$0xff]   ;;  %v797_v18 = vld [vmem:[#allocation7 + $0x50] ss:$8 sps:$4 sm:$0xff]   ;;  %v804_v24 = vld [vmem:[#allocation8 + $0x40] sm:$0xff]   ;;  %v207_v56 = vsub.s32 0, %v206_v55 }
  0x61   :  { %735 = vmatprep.subr.bf16.mxu0 %v977_v0  ;;  %298 = vmatpush1.bf16.msra.mxu1 %v785_v7  ;;  %v801_v21 = vld [vmem:[#allocation7 + $0x74] ss:$8 sps:$4 sm:$0xff]   ;;  %v803_v22 = vld [vmem:[#allocation7 + $0x70] ss:$8 sps:$4 sm:$0xff]   ;;  %v805_v25 = vld [vmem:[#allocation8] sm:$0xff]   ;;  %v211_v58 = vsub.s32 1, %v206_v55 }
  0x62   :  { %299 = vmatprep.subr.bf16.mxu1 %v786_v8  ;;  %v806_v26 = vld [vmem:[#allocation8 + $0x48] sm:$0xff]   ;;  %v808_v28 = vld [vmem:[#allocation8 + $0x50] sm:$0xff]   ;;  %v810_v30 = vld [vmem:[#allocation8 + $0x58] sm:$0xff]   ;;  %s980_s13 = smov [#allocation11]  }
  0x63   :  { %v807_v27 = vld [vmem:[#allocation8 + $0x8] sm:$0xff]   ;;  %v809_v29 = vld [vmem:[#allocation8 + $0x10] sm:$0xff]   ;;  %v811_v31 = vld [vmem:[#allocation8 + $0x18] sm:$0xff]   ;;  %s636_s1 = sshll.u32 %s980_s13, 4  ;;  %s637_s1 = int_to_ptr.vmem [resolvable:$true] %s636_s1 }
  0x64   :  { %736 = vmatpush3.bf16.msra.mxu0 %v778_v5  ;;  %v812_v32 = vld [vmem:[#allocation8 + $0x60] sm:$0xff]   ;;  %v814_v34 = vld [vmem:[#allocation8 + $0x68] sm:$0xff]   ;;  %v647_v36 = vld [vmem:[%s1142_s2] ss:$0 sm:$0xff]  ;;  %p943_p13 = scmp.lt.s32.totalorder %s637_s1, %s637_s1 }
  0x65   :  { %737 = vmatprep.subr.bf16.mxu0 %v977_v0  ;;  %300 = vmatpush1.bf16.msra.mxu1 %v788_v11  ;;  %v813_v33 = vld [vmem:[#allocation8 + $0x20] sm:$0xff]   ;;  %v815_v35 = vld [vmem:[#allocation8 + $0x28] sm:$0xff]   ;;  %v816_v44 = vld [vmem:[#allocation8 + $0x70] sm:$0xff]  }
  0x66   :  { %301 = vmatprep.subr.bf16.mxu1 %v789_v13  ;;  %v817_v45 = vld [vmem:[#allocation8 + $0x30] sm:$0xff]   ;;  %v818_v46 = vld [vmem:[#allocation8 + $0x78] sm:$0xff]   ;;  %v820_v48 = vld [vmem:[#allocation10] sm:$0xff]  }
  0x67   :  { %v819_v47 = vld [vmem:[#allocation8 + $0x38] sm:$0xff]   ;;  %v821_v49 = vld [vmem:[#allocation10 + $0x8] sm:$0xff]   ;;  %v822_v50 = vld [vmem:[#allocation10 + $0x10] sm:$0xff]  }
  0x68   :  { %738 = vmatpush3.bf16.msra.mxu0 %v779_v9  ;;  %v823_v51 = vld [vmem:[#allocation10 + $0x18] sm:$0xff]   ;;  %v824_v52 = vld [vmem:[#allocation10 + $0x20] sm:$0xff]   ;;  %v825_v53 = vld [vmem:[#allocation10 + $0x28] sm:$0xff]  }
  0x69   :  { %302 = vmatpush1.bf16.msra.mxu1 %v791_v14  ;;  %700 = vmatprep.subr.bf16.mxu0 %v804_v24  ;;  %v203_v57 = vld [vmem:[%s1144_s4] sm:$0x3]  ;;  %v826_v8 = vld [vmem:[#allocation10 + $0x30] sm:$0xff]  }
  0x6a   :  { %303 = vmatprep.subr.bf16.mxu1 %v792_v15  ;;  %v208_v59 = vrot.slane %v203_v57, %v207_v56  ;;  %v212_v60 = vrot.slane %v203_v57, %v211_v58  ;;  %v827_v9 = vld [vmem:[#allocation10 + $0x38] sm:$0xff]  }
  0x6b   :  { %740 = vmatmul.mubr.msk.bf16.vlgmr.msra.gmra.mrb[0].mxu0 %vm141_vm1, %v101_v12  ;;  %v669_v11 = vld [vmem:[%s1146_s6] ss:$0 sm:$0xff]  ;;  %s938_s6 = scalar_lea.vmem %s637_s1, 64 }
  0x6c   :  { %701 = vmatpush3.bf16.msra.mxu0 %v805_v25  ;;  %p939_p12 = scmp.ne.s32.totalorder %s637_s1, %s938_s6  ;;  %p944_p0 = scmp.lt.s32.totalorder %s938_s6, %s938_s6 }
  0x6d   :  { %304 = vmatpush1.bf16.msra.mxu1 %v794_v16  ;;  %702 = vmatprep.subr.bf16.mxu0 %v806_v26 }
  0x6e   :  { %305 = vmatprep.subr.bf16.mxu1 %v795_v17  ;;  %p945_p1 = por %p944_p0, %p943_p13 }
  0x70   :  { %703 = vmatpush3.bf16.msra.mxu0 %v807_v27  ;;  %p946_p2 = pnand %p945_p1, %p939_p12 }
  0x71   :  { %306 = vmatpush1.bf16.msra.mxu1 %v797_v18  ;;  %704 = vmatprep.subr.bf16.mxu0 %v808_v28 }
  0x72   :  { %307 = vmatprep.subr.bf16.mxu1 %v798_v19  ;;  %v686_v19 = vld [vmem:[%s1148_s8] ss:$0 sm:$0xff] }
  0x74   :  { %705 = vmatpush3.bf16.msra.mxu0 %v809_v29 }
  0x75   :  { %308 = vmatpush1.bf16.msra.mxu1 %v800_v20  ;;  %706 = vmatprep.subr.bf16.mxu0 %v810_v30 }
  0x76   :  { %309 = vmatprep.subr.bf16.mxu1 %v801_v21 }
  0x78   :  { %707 = vmatpush3.bf16.msra.mxu0 %v811_v31 }
  0x79   :  { %310 = vmatpush1.bf16.msra.mxu1 %v803_v22  ;;  %708 = vmatprep.subr.bf16.mxu0 %v812_v32 }
  0x7a   :  { %743 = vmatprep.subr.bf16.mxu1 %v977_v0 }
  0x7c   :  { %709 = vmatpush3.bf16.msra.mxu0 %v813_v33 }
  0x7d   :  { %710 = vmatprep.subr.bf16.mxu0 %v814_v34 }
  0x80   :  { %711 = vmatpush3.bf16.msra.mxu0 %v815_v35 }
  0x81   :  { %712 = vmatprep.subr.bf16.mxu0 %v816_v44 }
  0x84   :  { %713 = vmatpush3.bf16.msra.mxu0 %v817_v45 }
  0x85   :  { %714 = vmatprep.subr.bf16.mxu0 %v818_v46 }
  0x88   :  { %715 = vmatpush3.bf16.msra.mxu0 %v819_v47 }
 0x13e   :  { %v179_v37 = vpop.f32.mrb[0].mxu0 }
 0x13f   :  { %v180_v38 = vadd.f32 %v647_v36, %v179_v37  ;;  %v741_v39 = vpop.f32.mrb[1].mxu0 }
 0x140   :  { %v182_v40 = vpop.f32.mrb[2].mxu0 }
 0x141   :  { %v185_v41 = vmax.f32 %v180_v38, 0.0  ;;  %v742_v42 = vpop.f32.mrb[3].mxu0 }
 0x143   :  { %v186_v43 = vpack.c.bf16 %v185_v41, %v185_v41 }
 0x145   :  { %328 = vmatmul.mubr.bf16.vlgmr.msra.gmra.mrb[0].mxu1 %v186_v43 }
 0x146   :  { %759 = vmatprep.mubr.msk.bf16.mxu1 %vm978_vm0, %v977_v0  ;;  %744 = vmatpush3.bf16.msra.mxu1 %v820_v48 }
 0x147   :  { %745 = vmatprep.subr.bf16.mxu1 %v977_v0 }
 0x14a   :  { %746 = vmatpush3.bf16.msra.mxu1 %v821_v49 }
 0x14b   :  { %747 = vmatprep.subr.bf16.mxu1 %v977_v0 }
 0x14e   :  { %748 = vmatpush3.bf16.msra.mxu1 %v822_v50 }
 0x14f   :  { %749 = vmatprep.subr.bf16.mxu1 %v977_v0 }
 0x152   :  { %750 = vmatpush3.bf16.msra.mxu1 %v823_v51 }
 0x153   :  { %751 = vmatprep.subr.bf16.mxu1 %v977_v0 }
 0x156   :  { %752 = vmatpush3.bf16.msra.mxu1 %v824_v52 }
 0x157   :  { %753 = vmatprep.subr.bf16.mxu1 %v977_v0 }
 0x15a   :  { %754 = vmatpush3.bf16.msra.mxu1 %v825_v53 }
 0x15b   :  { %755 = vmatprep.subr.bf16.mxu1 %v977_v0 }
 0x15e   :  { %756 = vmatpush3.bf16.msra.mxu1 %v826_v8 }
 0x15f   :  { %757 = vmatprep.subr.bf16.mxu1 %v977_v0 }
 0x162   :  { %758 = vmatpush3.bf16.msra.mxu1 %v827_v9 }
 0x218   :  { %v329_v61 = vpop.f32.mrb[0].mxu1 }
 0x219   :  { %v330_v62 = vadd.f32 %v329_v61, %v208_v59  ;;  %v331_v63 = vpop.f32.mrb[1].mxu1 }
 0x21a   :  { %v332_v1 = vadd.f32 %v331_v63, %v212_v60  ;;  %v333_v2 = vpop.f32.mrb[2].mxu1 }
 0x21b   :  { %v336_v3 = vmax.f32 %v330_v62, 0.0  ;;  %v334_v4 = vpop.f32.mrb[3].mxu1 }
 0x21c   :  { %v337_v5 = vmax.f32 %v332_v1, 0.0 }
 0x21d   :  { %v338_v7 = vpack.c.bf16 %v336_v3, %v336_v3 }
 0x21e   :  { %v339_v6 = vpack.c.bf16 %v337_v5, %v337_v5 }
 0x220   :  { %507 = vmatprep.mubr.bf16.mxu0 %v339_v6 }
 0x221   :  { %508 = vmatmul.mubr.bf16.vlgmr.msra.gmra.mrb[4].mxu0 %v338_v7 }
 0x2f4   :  { %v716_v10 = vpop.f32.mrb[4].mxu0 }
 0x2f5   :  { %v717_v12 = vpop.f32.mrb[5].mxu0 }
 0x2f6   :  { %v718_v13 = vadd.f32 %v717_v12, %v716_v10  ;;  %v719_v14 = vpop.f32.mrb[6].mxu0 }
 0x2f7   :  { %v720_v15 = vpop.f32.mrb[7].mxu0 }
 0x2f8   :  { %v510_v16 = vadd.f32 %v718_v13, %v669_v11 }
 0x2fa   :  { %v515_v17 = vmax.f32 %v510_v16, 0.0 }
 0x2fc   :  { %v516_v18 = vpack.c.bf16 %v515_v17, %v515_v17 }
 0x2fe   :  { %760 = vmatmul.mubr.bf16.vlgmr.msra.gmra.mrb[4].mxu1 %v516_v18 }
 0x3d1   :  { %v622_v0 = vpop.f32.mrb[4].mxu1 }
 0x3d2   :  { %v623_v20 = vadd.f32 %v686_v19, %v622_v0  ;;  %v761_v21 = vpop.f32.mrb[5].mxu1 }
 0x3d3   :  { %v625_v22 = vpop.f32.mrb[6].mxu1 }
 0x3d4   :  { %v628_v23 = vpack.c.bf16 %v623_v20, %v623_v20  ;;  %v762_v24 = vpop.f32.mrb[7].mxu1 }
 0x3d6   :  { %629 = vst [vmem:[#allocation11] sm:$0xf] %v628_v23 }
 0x3d7   :  { %949 = shalt.err (!%p946_p2)
}
 0x3d8   :  { %s950_s8 = scalar_lea.hbm %s1149_s9, 64 }
 0x3d9   :  { %p951_p3 = scmp.ne.s32.totalorder %s1149_s9, %s950_s8  ;;  %p954_p4 = scmp.lt.u32.totalorder %s950_s8, %s1149_s9 }
 0x3db   :  { %p956_p5 = pnand %p954_p4, %p951_p3 }
 0x3dd   :  { %959 = shalt.err (!%p956_p5)
}
 0x3de   :  { %639 = dma.vmem_to_hbm [thread:$0]  %s637_s1, 64, %s1149_s9, [#allocation4]  }
 0x3df   :  { %966 = dma.done.wait [#allocation4], 64  }
 0x3e0   :  { %967 = vsyncadd [#allocation4], 4294967232 }
 0x3e1   :  { %643 = vsyncpa [#allocation3], 1 }
 0x3e2   :  { %644 = vsyncpa [#allocation6], 1 }
 0x3e3   :  { %645 = vsyncpa [#allocation9], 1 }
 0x3e4   :  { %646 = vsyncpa [#allocation4], 1 }

</bundles_post_ra>
